<compile_context>
chip_gen: v5e
topology: v5e:2x2
jax: 0.10.0
libtpu: 0.0.40
codegen_flags: <defaults>
</compile_context>

<pallas_src>
import functools

import jax
import jax.numpy as jnp
from jax.experimental import pallas as pl
from jax.experimental.pallas import tpu as pltpu

LANE = 128           # lane-dense padded output width (one MXU column block)
IN_FEATURES = 128    # ERFNet classifier input features
_MIN_SPLIT_ROWS = 512  # only split a single tile for v7x when each half >= this


def _round_up(x, m):
    return ((x + m - 1) // m) * m


def _sublane_multiple(dtype):
    # 8 rows for 4-byte dtypes, 16 for 2-byte (bf16), 32 for 1-byte (int8/fp8).
    itemsize = jnp.dtype(dtype).itemsize
    return max(8, 32 // itemsize)


def _plan_batch_tiles(batch, sublane, tb_max):
    """Tile count first, then tile size -> padding <= (sublane-1) rows/tile."""
    b_min = _round_up(batch, sublane)
    n_tiles = (b_min + tb_max - 1) // tb_max
    # v7x: a large single tile can't be sharded across the two TensorCores.
    if n_tiles == 1 and b_min >= 2 * _MIN_SPLIT_ROWS:
        n_tiles = 2
    # Keep an even tile count when splitting so both TCs get balanced work.
    if n_tiles > 1 and n_tiles % 2 == 1:
        n_tiles += 1
    tb_eff = _round_up((b_min + n_tiles - 1) // n_tiles, sublane)
    b_rows = n_tiles * tb_eff
    return n_tiles, tb_eff, b_rows


def _linear_kernel(x_ref, w_ref, b_ref, o_ref):
    # x_ref: (tb, 128)   activation row tile
    # w_ref: (128, 128)  pre-transposed weight (in, out_padded) -> canonical MXU feed
    # b_ref: (1, 128)    lane-dense f32 bias
    # o_ref: (tb, 128)   lane-dense output tile (unmasked stores)
    acc = jnp.dot(x_ref[...], w_ref[...], preferred_element_type=jnp.float32)
    o_ref[...] = (acc + b_ref[...]).astype(o_ref.dtype)


def prepare_classifier_params(weight, bias):
    """One-time transform of nn.Linear params to a lane-dense, MXU-ready layout.

    weight: (num_classes, 128) PyTorch convention -> (128, 128) transposed,
            zero-padded columns (done once; static inference weights).
    bias:   (num_classes,) -> (1, 128) zero-padded, f32.
    """
    num_classes, in_f = weight.shape
    assert in_f == IN_FEATURES
    w_t = (
        jnp.zeros((IN_FEATURES, LANE), weight.dtype)
        .at[:, :num_classes].set(weight.T)
    )
    b_pad = (
        jnp.zeros((1, LANE), jnp.float32)
        .at[0, :num_classes].set(bias.astype(jnp.float32))
    )
    return w_t, b_pad


@functools.partial(jax.jit, static_argnames=("num_classes", "tb"))
def classifier_forward(x, w_t, b_pad, *, num_classes, tb=2048):
    """Pallas equivalent of Classifier.forward.

    x:     (B, 128, H, W) with H*W == 1, or already (B, 128)
    w_t:   (128, 128) pre-transposed padded weight from prepare_classifier_params
    b_pad: (1, 128)   padded f32 bias from prepare_classifier_params
    returns (B, num_classes)
    """
    B = x.shape[0]
    x2d = x.reshape(B, IN_FEATURES)              # == input.view(B, 128)
    dtype = x2d.dtype
    itemsize = jnp.dtype(dtype).itemsize

    sublane = _sublane_multiple(dtype)
    n_tiles, tb_eff, b_rows = _plan_batch_tiles(B, sublane, tb)
    if b_rows != B:                              # skip the extra HBM pass when aligned
        x2d = jnp.pad(x2d, ((0, b_rows - B), (0, 0)))

    # Double-buffered in+out tiles plus resident weight/bias; only raise the
    # scoped-VMEM limit when very large tiles would exceed v5e's 16 MiB default.
    w_item = jnp.dtype(w_t.dtype).itemsize
    vmem_needed = (
        2 * tb_eff * (IN_FEATURES + LANE) * itemsize
        + 2 * (LANE * IN_FEATURES * w_item + LANE * 4)
    )
    vmem_limit = None
    if vmem_needed > (14 << 20):
        vmem_limit = min(_round_up(vmem_needed + (2 << 20), 1 << 20), 64 << 20)

    cost = pl.CostEstimate(
        flops=2 * b_rows * IN_FEATURES * LANE,
        transcendentals=0,
        bytes_accessed=(
            b_rows * IN_FEATURES * itemsize        # activation read
            + b_rows * LANE * itemsize             # output write
            + LANE * IN_FEATURES * w_item          # weight read
            + LANE * 4                             # bias read
        ),
    )

    out = pl.pallas_call(
        _linear_kernel,
        out_shape=jax.ShapeDtypeStruct((b_rows, LANE), dtype),
        grid=(n_tiles,),
        in_specs=[
            pl.BlockSpec((tb_eff, IN_FEATURES), lambda i: (i, 0)),
            pl.BlockSpec((IN_FEATURES, LANE), lambda i: (0, 0)),   # resident weight
            pl.BlockSpec((1, LANE), lambda i: (0, 0)),             # resident bias
        ],
        out_specs=pl.BlockSpec((tb_eff, LANE), lambda i: (i, 0)),
        compiler_params=pltpu.CompilerParams(
            # Independent batch tiles -> shard across both TensorCores on v7x.
            dimension_semantics=("parallel",),
            vmem_limit_bytes=vmem_limit,
        ),
        cost_estimate=cost,
    )(x2d, w_t, b_pad)

    # TODO(synk): let the consumer read the padded (B, 128) logits directly (or
    # fuse this slice into the consumer) to drop one more small HBM pass.
    return out[:B, :num_classes]


def reference_forward(x, weight, bias):
    B = x.shape[0]
    return x.reshape(B, IN_FEATURES).astype(jnp.float32) @ weight.T.astype(
        jnp.float32
    ) + bias.astype(jnp.float32)[None, :]


if __name__ == "__main__":
    num_classes = 16

    key = jax.random.PRNGKey(0)
    kx, kw, kb, kx2, kx3, kx4 = jax.random.split(key, 6)

    # Deterministic nn.Linear(128, num_classes) init: U(-1/sqrt(128), 1/sqrt(128))
    bound = 1.0 / jnp.sqrt(128.0)
    weight = jax.random.uniform(kw, (num_classes, IN_FEATURES), jnp.float32, -bound, bound)
    bias = jax.random.uniform(kb, (num_classes,), jnp.float32, -bound, bound)

    # One-time padded/transposed param transform (static inference weights).
    w_t, b_pad = prepare_classifier_params(weight, bias)

    # Case 1: tiny batch, NCHW encoder output (B, 128, 1, 1) as implied by view(B, 128).
    B = 2
    x = jax.random.normal(kx, (B, IN_FEATURES, 1, 1), dtype=jnp.float32)
    out = jax.block_until_ready(classifier_forward(x, w_t, b_pad, num_classes=num_classes))
    ref = reference_forward(x, weight, bias)
    assert out.shape == (B, num_classes)
    assert jnp.allclose(out, ref, atol=1e-5, rtol=1e-5), "mismatch vs reference (B=2)"

    # Case 2: ragged batch -> tail padding is now only 4 rows (264), not 252 (512).
    B2 = 260
    x2 = jax.random.normal(kx2, (B2, IN_FEATURES, 1, 1), dtype=jnp.float32)
    out2 = jax.block_until_ready(classifier_forward(x2, w_t, b_pad, num_classes=num_classes))
    ref2 = reference_forward(x2, weight, bias)
    assert out2.shape == (B2, num_classes)
    assert jnp.allclose(out2, ref2, atol=1e-5, rtol=1e-5), "mismatch vs reference (B=260)"

    # Case 3: large batch -> >=2 tiles (even count) so v7x can use both TCs.
    B3 = 2100
    x3 = jax.random.normal(kx3, (B3, IN_FEATURES, 1, 1), dtype=jnp.float32)
    out3 = jax.block_until_ready(classifier_forward(x3, w_t, b_pad, num_classes=num_classes))
    ref3 = reference_forward(x3, weight, bias)
    assert out3.shape == (B3, num_classes)
    assert jnp.allclose(out3, ref3, atol=1e-4, rtol=1e-4), "mismatch vs reference (B=2100)"

    # Case 4: bf16 activations + weights (16-row sublane rounding), f32 accumulate.
    w_t_bf, b_pad_bf = prepare_classifier_params(weight.astype(jnp.bfloat16), bias)
    B4 = 34
    x4 = jax.random.normal(kx4, (B4, IN_FEATURES, 1, 1), dtype=jnp.float32).astype(jnp.bfloat16)
    out4 = jax.block_until_ready(classifier_forward(x4, w_t_bf, b_pad_bf, num_classes=num_classes))
    ref4 = reference_forward(x4, weight.astype(jnp.bfloat16), bias)
    assert out4.shape == (B4, num_classes)
    assert out4.dtype == jnp.bfloat16
    assert jnp.allclose(out4.astype(jnp.float32), ref4, atol=5e-2, rtol=5e-2), \
        "mismatch vs reference (bf16, B=34)"

    print("KERNEL_OK")
</pallas_src>

<mosaic_0001>
module attributes {stable_mosaic.version = 11 : i64} {
  func.func @_linear_kernel(%arg0: i32, %arg1: memref<8x128xf32, #tpu.memory_space<vmem>>, %arg2: memref<128x128xf32, #tpu.memory_space<vmem>>, %arg3: memref<1x128xf32, #tpu.memory_space<vmem>>, %arg4: memref<8x128xf32, #tpu.memory_space<vmem>>) attributes {dimension_semantics = [#tpu.dimension_semantics<parallel>], iteration_bounds = array<i64: 1>, scalar_prefetch = 0 : i64, scratch_operands = 0 : i64, tpu.core_type = #tpu.core_type<tc>, window_params = [{transform_indices = @transform_0, window_bounds = array<i64: 8, 128>}, {pipeline_mode = #tpu.pipeline_mode<synchronous>, transform_indices = @transform_1, window_bounds = array<i64: 128, 128>}, {pipeline_mode = #tpu.pipeline_mode<synchronous>, transform_indices = @transform_2, window_bounds = array<i64: 1, 128>}, {transform_indices = @transform_3, window_bounds = array<i64: 8, 128>}]} {
    %c0 = arith.constant 0 : index
    %c0_0 = arith.constant 0 : index
    %0 = vector.load %arg1[%c0, %c0_0] : memref<8x128xf32, #tpu.memory_space<vmem>>, vector<8x128xf32>
    %c0_1 = arith.constant 0 : index
    %c0_2 = arith.constant 0 : index
    %1 = vector.load %arg2[%c0_1, %c0_2] : memref<128x128xf32, #tpu.memory_space<vmem>>, vector<128x128xf32>
    %cst = arith.constant dense<0.000000e+00> : vector<8x128xf32>
    %2 = tpu.matmul %0, %1, %cst {dimension_numbers = #tpu.dot_dimension_numbers<[1], [0], [0], [1], [0, 0, 1, 1], [], []>} : vector<8x128xf32>, vector<128x128xf32>, vector<8x128xf32> -> vector<8x128xf32>
    %c0_3 = arith.constant 0 : index
    %c0_4 = arith.constant 0 : index
    %3 = vector.load %arg3[%c0_3, %c0_4] : memref<1x128xf32, #tpu.memory_space<vmem>>, vector<1x128xf32>
    %4 = vector.broadcast %3 : vector<1x128xf32> to vector<8x128xf32>
    %5 = arith.addf %2, %4 : vector<8x128xf32>
    %c0_5 = arith.constant 0 : index
    %c0_6 = arith.constant 0 : index
    %6 = vector.load %arg4[%c0_5, %c0_6] : memref<8x128xf32, #tpu.memory_space<vmem>>, vector<8x128xf32>
    tpu.vector_store %arg4[%c0_5, %c0_6], %5 {strides = array<i32>} : memref<8x128xf32, #tpu.memory_space<vmem>>, vector<8x128xf32>,
    return
  }
  func.func @transform_0(%arg0: i32) -> (i32, i32) {
    %c0_i32 = arith.constant 0 : i32
    %c0_i32_0 = arith.constant 0 : i32
    return %arg0, %c0_i32 : i32, i32
  }
  func.func @transform_1(%arg0: i32) -> (i32, i32) {
    %c0_i32 = arith.constant 0 : i32
    %c0_i32_0 = arith.constant 0 : i32
    %c0_i32_1 = arith.constant 0 : i32
    return %c0_i32, %c0_i32_0 : i32, i32
  }
  func.func @transform_2(%arg0: i32) -> (i32, i32) {
    %c0_i32 = arith.constant 0 : i32
    %c0_i32_0 = arith.constant 0 : i32
    %c0_i32_1 = arith.constant 0 : i32
    return %c0_i32, %c0_i32_0 : i32, i32
  }
  func.func @transform_3(%arg0: i32) -> (i32, i32) {
    %c0_i32 = arith.constant 0 : i32
    %c0_i32_0 = arith.constant 0 : i32
    return %arg0, %c0_i32 : i32, i32
  }
}

</mosaic_0001>

<bundles_post_ra>
// kernel: classifier_forward.1
= control target key start
LH: loop header
LB: loop body
LE: loop exit
PB: predicated region body
PF: predicated region fallthrough
CT: control target
= control target key end

     0   :  { %8 = vsyncpa [#allocation3], 0  ;;  %s107_s15 = smov [#allocation2]   ;;  %s108_s17 = smov 128   ;;  %s142_s0 = inlined_call_operand.vmem [shape: f32[8,128], index: 0, kind: input, shape index: {}]   ;;  %s143_s1 = inlined_call_operand.hbm [shape: f32[128,128], index: 1, kind: input, shape index: {}]   ;;  %s144_s2 = inlined_call_operand.vmem [shape: f32[1,128], index: 2, kind: input, shape index: {}]   ;;  %s145_s3 = inlined_call_operand.vmem [shape: f32[8,128], index: 3, kind: output, shape index: {}]  }
   0x1   :  { %s15_s14 = sshll.u32 %s143_s1, 4  ;;  %s17_s16 = sshll.u32 %s107_s15, 4  ;;  %s16_s14 = int_to_ptr.hbm [resolvable:$true] %s15_s14  ;;  %s18_s16 = int_to_ptr.vmem [resolvable:$true] %s17_s16 }
   0x2   :  { %s109_s18 = smov 8  }
   0x3   :  { %23 = dma.hbm_to_vmem [thread:$0]  %s16_s14, 2048, %s18_s16, [#allocation3], %s108_s17, %s108_s17, %s109_s18  }
   0x4   :  { %105 = dma.done.wait [#allocation3], 2048  }
   0x5   :  { %106 = vsyncadd [#allocation3], 4294965248  ;;  %v46_v0 = vld [vmem:[#allocation2 + $0x78] sm:$0xff]  ;;  %v45_v1 = vld [vmem:[#allocation2 + $0x70] sm:$0xff] }
   0x6   :  { %51 = vmatpush.msra.mxu0 %v46_v0  ;;  %v44_v2 = vld [vmem:[#allocation2 + $0x68] sm:$0xff]  ;;  %v43_v3 = vld [vmem:[#allocation2 + $0x60] sm:$0xff]  ;;  %v42_v4 = vld [vmem:[#allocation2 + $0x58] sm:$0xff] }
   0x7   :  { %v41_v5 = vld [vmem:[#allocation2 + $0x50] sm:$0xff]  ;;  %v40_v6 = vld [vmem:[#allocation2 + $0x48] sm:$0xff]  ;;  %v39_v7 = vld [vmem:[#allocation2 + $0x40] sm:$0xff] }
   0x8   :  { %52 = vmatpush.msra.mxu0 %v45_v1  ;;  %v38_v8 = vld [vmem:[#allocation2 + $0x38] sm:$0xff]  ;;  %v37_v9 = vld [vmem:[#allocation2 + $0x30] sm:$0xff]  ;;  %v36_v10 = vld [vmem:[#allocation2 + $0x28] sm:$0xff] }
   0x9   :  { %v35_v11 = vld [vmem:[#allocation2 + $0x20] sm:$0xff]  ;;  %v34_v12 = vld [vmem:[#allocation2 + $0x18] sm:$0xff]  ;;  %v33_v13 = vld [vmem:[#allocation2 + $0x10] sm:$0xff] }
   0xa   :  { %53 = vmatpush.msra.mxu0 %v44_v2  ;;  %v32_v14 = vld [vmem:[#allocation2 + $0x8] sm:$0xff]  ;;  %v31_v15 = vld [vmem:[#allocation2] sm:$0xff] }
   0xb   :  { %v30_v16 = vld [vmem:[%s142_s0] sm:$0xff] }
   0xc   :  { %54 = vmatpush.msra.mxu0 %v43_v3  ;;  %v80_v17 = vld [vmem:[%s144_s2] ss:$0 sm:$0xff] }
   0xe   :  { %55 = vmatpush.msra.mxu0 %v42_v4 }
  0x10   :  { %56 = vmatpush.msra.mxu0 %v41_v5 }
  0x12   :  { %57 = vmatpush.msra.mxu0 %v40_v6 }
  0x14   :  { %58 = vmatpush.msra.mxu0 %v39_v7 }
  0x16   :  { %59 = vmatpush.msra.mxu0 %v38_v8 }
  0x18   :  { %60 = vmatpush.msra.mxu0 %v37_v9 }
  0x1a   :  { %61 = vmatpush.msra.mxu0 %v36_v10 }
  0x1c   :  { %62 = vmatpush.msra.mxu0 %v35_v11 }
  0x1e   :  { %63 = vmatpush.msra.mxu0 %v34_v12 }
  0x20   :  { %64 = vmatpush.msra.mxu0 %v33_v13 }
  0x22   :  { %65 = vmatpush.msra.mxu0 %v32_v14 }
  0x24   :  { %66 = vmatpush.msra.mxu0 %v31_v15 }
  0x25   :  { %67 = vmatmul.f32.vlgmr.msra.gmra.mxu0 %v30_v16 }
  0xa2   :  { %v68_v18 = vpop.f32.mrf.mxu0 }
  0xa3   :  { %v69_v19 = vadd.f32 %v80_v17, %v68_v18 }
  0xa5   :  { %71 = vst [vmem:[%s145_s3] sm:$0xff] %v69_v19 }
  0xa6   :  { %76 = vsyncpa [#allocation3], 1 }

</bundles_post_ra>
